<compile_context>
chip_gen: v6e
topology: v6e:2x2x1
jax: 0.10.0
libtpu: 0.0.40
codegen_flags: <defaults>
</compile_context>

<pallas_src>
import functools

import jax
import jax.numpy as jnp
from jax.experimental import pallas as pl
from jax.experimental.pallas import tpu as pltpu

_LANES = 128
_SUBLANES = 8
_NUM_CORES = 2  # partial-sum slots / TensorCores to shard the reduction over


def _round_up(x, m):
    return ((x + m - 1) // m) * m


def _rmse_partial_kernel(p_ref, t_ref, out_ref, *, block_rows, valid_rows,
                         steps_per_core):
    """Accumulate a per-slot partial sum of squared errors.

    The (1, 8, 128) output block is revisited across the 'arbitrary' axis, so
    it stays resident in VMEM and acts as a vreg-shaped accumulator.
    """
    c = pl.program_id(0)   # partial-sum slot ("parallel")
    i = pl.program_id(1)   # reduction step   ("arbitrary")

    @pl.when(i == 0)
    def _():
        out_ref[...] = jnp.zeros_like(out_ref)

    # Cast in VMEM (VPU, free); HBM traffic stays at the input dtype width.
    d = p_ref[...].astype(jnp.float32) - t_ref[...].astype(jnp.float32)

    # Mask rows past the logical end of the data. Covers (a) a partial last
    # block and (b) slots whose logical range runs past the array (their block
    # index is clamped in the index_map; the mask zeroes the duplicate data).
    row0 = (c * steps_per_core + i) * block_rows
    row_ids = row0 + jax.lax.broadcasted_iota(jnp.int32, (block_rows, 1), 0)
    d = jnp.where(row_ids < valid_rows, d, 0.0)

    # Vector accumulation: fold (block_rows, 128) onto (8, 128) with pure
    # element-wise vreg adds (sum over the leading axis only) -- no per-step
    # cross-lane reduce on the critical path.
    sq = d * d
    out_ref[...] += jnp.sum(
        sq.reshape(block_rows // _SUBLANES, _SUBLANES, _LANES), axis=0
    )[None]


def rmse_loss(predictions, targets, *, rows_per_tile=4096):
    """Pallas equivalent of RMSELoss().forward: sqrt(mean((p - t)^2))."""
    assert predictions.shape == targets.shape, "shape mismatch (MSELoss semantics)"
    n_elements = predictions.size
    assert n_elements > 0

    # Flatten in the ORIGINAL dtype (no wrapper cast => no extra HBM pass).
    p = predictions.reshape(-1)
    t = targets.reshape(-1)

    # Pad only up to the next multiple of 128 lanes (zeros diff to 0; we divide
    # by the true element count, so the mean stays exact).
    # TODO(synk): when n % 128 != 0 this still copies once; the tiny tail could
    # instead be folded into the wrapper-side reduction to avoid it entirely.
    padded_n = _round_up(n_elements, _LANES)
    if padded_n != n_elements:
        pad = padded_n - n_elements
        p = jnp.pad(p, (0, pad))
        t = jnp.pad(t, (0, pad))

    rows = padded_n // _LANES
    p2 = p.reshape(rows, _LANES)
    t2 = t.reshape(rows, _LANES)

    # Block sizing: 4096 rows x 128 lanes x 4 B = 2 MiB per f32 input block.
    # 2 inputs x 2 pipeline buffers ~= 8 MiB: within default scoped VMEM on
    # v5e (16 MiB), v6e (32 MiB) and v7x (32 MiB scoped / 64 MiB physical).
    rows_per_tile = max(_SUBLANES, _round_up(rows_per_tile, _SUBLANES))
    block_rows = min(rows_per_tile, _round_up(rows, _SUBLANES))
    n_blocks = (rows + block_rows - 1) // block_rows
    steps_per_core = (n_blocks + _NUM_CORES - 1) // _NUM_CORES
    last_block = n_blocks - 1

    def in_map(c, i):
        # Clamp so the DMA never targets a block fully past the array; the
        # in-kernel row mask zeroes any duplicated / out-of-range contribution.
        return (jnp.minimum(c * steps_per_core + i, last_block), 0)

    kernel = functools.partial(
        _rmse_partial_kernel,
        block_rows=block_rows,
        valid_rows=rows,
        steps_per_core=steps_per_core,
    )

    partials = pl.pallas_call(
        kernel,
        out_shape=jax.ShapeDtypeStruct((_NUM_CORES, _SUBLANES, _LANES),
                                       jnp.float32),
        grid_spec=pltpu.PrefetchScalarGridSpec(
            num_scalar_prefetch=0,
            grid=(_NUM_CORES, steps_per_core),
            in_specs=[
                pl.BlockSpec((block_rows, _LANES), in_map),
                pl.BlockSpec((block_rows, _LANES), in_map),
            ],
            out_specs=pl.BlockSpec((1, _SUBLANES, _LANES),
                                   lambda c, i: (c, 0, 0)),
        ),
        compiler_params=pltpu.CompilerParams(
            dimension_semantics=("parallel", "arbitrary"),
        ),
    )(p2, t2)

    # Single cross-lane/sublane reduction + sqrt, done once (tiny XLA op).
    return jnp.sqrt(jnp.sum(partials) / jnp.float32(n_elements))


if __name__ == "__main__":
    key = jax.random.PRNGKey(0)
    kp, kt = jax.random.split(key)
    # Small NCHW-like shapes consistent with a typical regression output.
    predictions = jax.random.normal(kp, (2, 4, 16, 16), dtype=jnp.float32)
    targets = jax.random.normal(kt, (2, 4, 16, 16), dtype=jnp.float32)

    loss = rmse_loss(predictions, targets)
    jax.block_until_ready(loss)

    # Reference check (plain JAX): sqrt(mean((p - t)^2))
    ref = jnp.sqrt(jnp.mean((predictions - targets) ** 2))
    assert jnp.allclose(loss, ref, rtol=1e-5, atol=1e-6), (loss, ref)

    print("KERNEL_OK")
</pallas_src>

<mosaic_0001>
module attributes {stable_mosaic.version = 11 : i64} {
  func.func @_rmse_partial_kernel(%arg0: i32, %arg1: i32, %arg2: memref<16x128xf32, #tpu.memory_space<vmem>>, %arg3: memref<16x128xf32, #tpu.memory_space<vmem>>, %arg4: memref<1x8x128xf32, #tpu.memory_space<vmem>>) attributes {dimension_semantics = [#tpu.dimension_semantics<parallel>, #tpu.dimension_semantics<arbitrary>], iteration_bounds = array<i64: 2, 1>, scalar_prefetch = 0 : i64, scratch_operands = 0 : i64, tpu.core_type = #tpu.core_type<tc>, window_params = [{transform_indices = @transform_0, window_bounds = array<i64: 16, 128>}, {transform_indices = @transform_1, window_bounds = array<i64: 16, 128>}, {transform_indices = @transform_2, window_bounds = array<i64: 1, 8, 128>}]} {
    %c0_i32 = arith.constant 0 : i32
    %0 = arith.cmpi eq, %arg1, %c0_i32 : i32
    %1 = arith.extui %0 : i1 to i32
    %c0_i32_0 = arith.constant 0 : i32
    %2 = arith.cmpi ne, %1, %c0_i32_0 : i32
    scf.if %2 {
      %cst_12 = arith.constant 0.000000e+00 : f32
      %25 = vector.broadcast %cst_12 : f32 to vector<1x8x128xf32>
      %c0_13 = arith.constant 0 : index
      %c0_14 = arith.constant 0 : index
      %c0_15 = arith.constant 0 : index
      %26 = vector.load %arg4[%c0_13, %c0_14, %c0_15] : memref<1x8x128xf32, #tpu.memory_space<vmem>>, vector<1x8x128xf32>
      tpu.vector_store %arg4[%c0_13, %c0_14, %c0_15], %25 {strides = array<i32>} : memref<1x8x128xf32, #tpu.memory_space<vmem>>, vector<1x8x128xf32>,
    } else {
    }
    %c0 = arith.constant 0 : index
    %c0_1 = arith.constant 0 : index
    %3 = vector.load %arg2[%c0, %c0_1] : memref<16x128xf32, #tpu.memory_space<vmem>>, vector<16x128xf32>
    %c0_2 = arith.constant 0 : index
    %c0_3 = arith.constant 0 : index
    %4 = vector.load %arg3[%c0_2, %c0_3] : memref<16x128xf32, #tpu.memory_space<vmem>>, vector<16x128xf32>
    %5 = arith.subf %3, %4 : vector<16x128xf32>
    %c1_i32 = arith.constant 1 : i32
    %6 = arith.muli %arg0, %c1_i32 : i32
    %7 = arith.addi %6, %arg1 : i32
    %c16_i32 = arith.constant 16 : i32
    %8 = arith.muli %7, %c16_i32 : i32
    %9 = tpu.iota {dimensions = array<i32: 0>} : vector<16x1xi32>
    %10 = vector.broadcast %8 : i32 to vector<16x1xi32>
    %11 = arith.addi %10, %9 : vector<16x1xi32>
    %c16_i32_4 = arith.constant 16 : i32
    %12 = vector.broadcast %c16_i32_4 : i32 to vector<16x1xi32>
    %13 = arith.cmpi slt, %11, %12 : vector<16x1xi32>
    %cst = arith.constant 0.000000e+00 : f32
    %14 = vector.shape_cast %13 : vector<16x1xi1> to vector<16x1xi1>
    %15 = vector.broadcast %14 : vector<16x1xi1> to vector<16x128xi1>
    %16 = vector.broadcast %cst : f32 to vector<16x128xf32>
    %17 = arith.select %15, %5, %16 : vector<16x128xi1>, vector<16x128xf32>
    %18 = arith.mulf %17, %17 : vector<16x128xf32>
    %c0_5 = arith.constant 0 : index
    %c0_6 = arith.constant 0 : index
    %c0_7 = arith.constant 0 : index
    %19 = vector.load %arg4[%c0_5, %c0_6, %c0_7] : memref<1x8x128xf32, #tpu.memory_space<vmem>>, vector<1x8x128xf32>
    %20 = vector.shape_cast %18 : vector<16x128xf32> to vector<2x8x128xf32>
    %cst_8 = arith.constant dense<0.000000e+00> : vector<8x128xf32>
    %21 = vector.multi_reduction <add>, %20, %cst_8 [0] : vector<2x8x128xf32> to vector<8x128xf32>
    %22 = vector.shape_cast %21 : vector<8x128xf32> to vector<1x8x128xf32>
    %23 = arith.addf %19, %22 : vector<1x8x128xf32>
    %c0_9 = arith.constant 0 : index
    %c0_10 = arith.constant 0 : index
    %c0_11 = arith.constant 0 : index
    %24 = vector.load %arg4[%c0_9, %c0_10, %c0_11] : memref<1x8x128xf32, #tpu.memory_space<vmem>>, vector<1x8x128xf32>
    tpu.vector_store %arg4[%c0_9, %c0_10, %c0_11], %23 {strides = array<i32>} : memref<1x8x128xf32, #tpu.memory_space<vmem>>, vector<1x8x128xf32>,
    return
  }
  func.func @transform_0(%arg0: i32, %arg1: i32) -> (i32, i32) {
    %c1_i32 = arith.constant 1 : i32
    %0 = arith.muli %arg0, %c1_i32 : i32
    %1 = arith.addi %0, %arg1 : i32
    %c0_i32 = arith.constant 0 : i32
    %2 = arith.minsi %1, %c0_i32 : i32
    %c0_i32_0 = arith.constant 0 : i32
    %c0_i32_1 = arith.constant 0 : i32
    return %2, %c0_i32_0 : i32, i32
  }
  func.func @transform_1(%arg0: i32, %arg1: i32) -> (i32, i32) {
    %c1_i32 = arith.constant 1 : i32
    %0 = arith.muli %arg0, %c1_i32 : i32
    %1 = arith.addi %0, %arg1 : i32
    %c0_i32 = arith.constant 0 : i32
    %2 = arith.minsi %1, %c0_i32 : i32
    %c0_i32_0 = arith.constant 0 : i32
    %c0_i32_1 = arith.constant 0 : i32
    return %2, %c0_i32_0 : i32, i32
  }
  func.func @transform_2(%arg0: i32, %arg1: i32) -> (i32, i32, i32) {
    %c0_i32 = arith.constant 0 : i32
    %c0_i32_0 = arith.constant 0 : i32
    %c0_i32_1 = arith.constant 0 : i32
    return %arg0, %c0_i32, %c0_i32_0 : i32, i32, i32
  }
}

</mosaic_0001>

<bundles_post_ra>
// kernel: tpu_custom_call.1
= control target key start
LH: loop header
LB: loop body
LE: loop exit
PB: predicated region body
PF: predicated region fallthrough
CT: control target
= control target key end

     0   :  { %7 = vsyncpa [#allocation3], 0  ;;  %s865_s0 = inlined_call_operand.hbm [shape: f32[16,128], index: 0, kind: input, shape index: {}]   ;;  %s866_s1 = inlined_call_operand.hbm [shape: f32[16,128], index: 1, kind: input, shape index: {}]   ;;  %s867_s2 = inlined_call_operand.hbm [shape: f32[2,8,128], index: 2, kind: output, shape index: {}]  }
   0x1   :  { %9 = vsyncpa [#allocation3 + $0x1], 0 }
   0x2   :  { %10 = vsyncpa [#allocation6], 0 }
   0x3   :  { %12 = vsyncpa [#allocation6 + $0x1], 0 }
   0x4   :  { %13 = vsyncpa [#allocation4], 0 }
   0x5   :  { %15 = vsyncpa [#allocation4 + $0x1], 0  ;;  %s686_s9 = smov 0   ;;  %s688_s10 = smov 0  }
   0x6   :  { %s690_s11 = smov 0   ;;  %s692_s12 = smov 0  }
   0x7   :  { %s694_s13 = smov 0   ;;  %s696_s14 = smov 0  }
   0x8   :  { %s698_s15 = smov 0   ;;  %s700_s16 = smov 0  }
   0x9 LB: > { %s388_s17 = sadd.s32 4294967295, %s664_s16   ;;  %s389_s18 = sadd.s32 4294967294, %s664_s16   ;;  %s664_s16 = sphi %s700_s16, %s21_s16   ;;  %s660_s15 = sphi %s698_s15, %s886_s15   ;;  %s656_s14 = sphi %s696_s14, %s885_s14   ;;  %s652_s13 = sphi %s694_s13, %s855_s13   ;;  %s648_s12 = sphi %s692_s12, %s884_s12   ;;  %s644_s11 = sphi %s690_s11, %s883_s11   ;;  %s640_s10 = sphi %s688_s10, %s882_s10   ;;  %s636_s9 = sphi %s686_s9, %s881_s9  }
   0xa   : > { %s33_s19 = sadd.s32 1, %s660_s15  ;;  %p633_p1 = scmp.ne.s32.totalorder %s652_s13, 0 }
   0xb   : > { %p35_p0 = scmp.ge.s32.totalorder %s33_s19, 2  ;;  %p54_p2 = scmp.eq.s32.totalorder %s664_s16, 0 }
   0xc   : > { %p59_p3 = scmp.ne.s32.totalorder %s652_s13, %s648_s12  ;;  %p60_p5 = scmp.eq.s32.totalorder %s388_s17, 0 }
   0xd   : > { %s888_s19 = smov (%p35_p0, %s33_s19), 0  ;;  %p732_p4 = por %p633_p1, %p54_p2 }
   0xe   : > { %p736_p6 = por %p60_p5, %p59_p3  ;;  %s101_s22 = ssub.s32 %s660_s15, %s888_s19 }
   0xf   : > { %p102_p7 = scmp.eq.s32.totalorder %s101_s22, 0  ;;  %s104_s23 = sadd.s32 1, %s644_s11 }
  0x10   : > { %s871_s21 = scalar_select %p736_p6, 1, 0 }
  0x11   : > { %s744_s24 = scalar_select %p102_p7, %s644_s11, %s104_s23  }
  0x12   : > { %p114_p8 = scmp.ne.s32.totalorder %s644_s11, %s640_s10  ;;  %p115_p9 = scmp.eq.s32.totalorder %s388_s17, 1 }
  0x13   : > { %p120_p10 = scmp.ne.s32.totalorder %s640_s10, %s636_s9  ;;  %p121_p11 = scmp.eq.s32.totalorder %s389_s18, 1 }
  0x14   : > { %p750_p12 = por %p115_p9, %p114_p8  ;;  %p426_p1 = scmp.lt.s32.totalorder %s664_s16, 2 }
  0x15   : > { %p755_p0 = por %p121_p11, %p120_p10  ;;  %s666_s27 = smov [#allocation2]  }
  0x16   : > { %s872_s25 = scalar_select %p750_p12, 1, 0 }
  0x17   : > { %s873_s26 = scalar_select %p755_p0, 1, 0 }
  0x18   : > { %s155_s28 = sshll.u32 %s666_s27, 4  ;;  %p762_p2 = pnand %p426_p1, %p732_p4  ;;  %s156_s28 = int_to_ptr.vmem [resolvable:$true] %s155_s28 }
  0x19   : > { %s503_s4 = scalar_lea.hbm %s865_s0, 256 }
  0x1a   : > { %p504_p3 = scmp.ne.s32.totalorder %s865_s0, %s503_s4  ;;  %p505_p5 = pneg %p762_p2 }
  0x1b   : > { %p510_p8 = scmp.lt.s32.totalorder %s503_s4, %s503_s4 }
  0x1c   : > { %p506_p7 = pnand %p505_p5, %p504_p3 }
  0x1e   : > { %p507_p4 = pneg %p506_p7 }
  0x20   : > { %p512_p9 = pnand %p510_p8, %p507_p4 }
  0x22   : > { %515 = shalt.err (!%p512_p9)
}
  0x23   : > { %s516_s7 = scalar_lea.vmem %s156_s28, 256  ;;  %s523_s8 = scalar_lea.vmem %s156_s28, 512 }
  0x24   : > { %p517_p10 = scmp.ne.s32.totalorder %s156_s28, %s516_s7  ;;  %p524_p13 = scmp.lt.s32.totalorder %s156_s28, %s156_s28 }
  0x25   : > { %p525_p0 = scmp.lt.s32.totalorder %s523_s8, %s516_s7 }
  0x26   : > { %p519_p11 = pnand %p517_p10, %p505_p5 }
  0x27   : > { %p526_p12 = por %p525_p0, %p524_p13 }
  0x28   : > { %p520_p1 = pneg %p519_p11 }
  0x2a   : > { %p527_p6 = pnand %p526_p12, %p520_p1 }
  0x2c   : > { %530 = shalt.err (!%p527_p6)
}
  0x2d   : > { %s667_s12 = smov 128   ;;  %s668_s17 = smov 8  }
  0x2e   : > { %418 = dma.hbm_to_vmem [thread:$0]  (!%p762_p2), %s865_s0, 256, %s156_s28, [#allocation3], %s667_s12, %s667_s12, %s668_s17  }
  0x2f   : > { %p398_p3 = scmp.ge.s32.totalorder %s664_s16, 1  ;;  %p187_p7 = scmp.lt.s32.totalorder %s664_s16, 3 }
  0x30   : > { %s669_s23 = smov [#allocation5]   ;;  %s531_s4 = scalar_lea.hbm %s866_s1, 256 }
  0x31   : > { %p787_p4 = pnand %p398_p3, %p187_p7  ;;  %s179_s27 = sshll.u32 %s669_s23, 4  ;;  %s180_s27 = int_to_ptr.vmem [resolvable:$true] %s179_s27 }
  0x32   : > { %p532_p6 = scmp.ne.s32.totalorder %s866_s1, %s531_s4  ;;  %p538_p0 = scmp.lt.s32.totalorder %s531_s4, %s531_s4 }
  0x33   : > { %s875_s22 = scalar_select %p787_p4, 1, 0 }
  0x34   : > { %p534_p12 = pnand %p532_p6, %p505_p5 }
  0x36   : > { %p535_p13 = pneg %p534_p12 }
  0x38   : > { %p540_p8 = pnand %p538_p0, %p535_p13 }
  0x3a   : > { %543 = shalt.err (!%p540_p8)
}
  0x3b   : > { %s544_s28 = scalar_lea.vmem %s180_s27, 256  ;;  %s551_s7 = scalar_lea.vmem %s180_s27, 512 }
  0x3c   : > { %p545_p9 = scmp.ne.s32.totalorder %s180_s27, %s544_s28  ;;  %p552_p1 = scmp.lt.s32.totalorder %s180_s27, %s180_s27 }
  0x3d   : > { %p553_p3 = scmp.lt.s32.totalorder %s551_s7, %s544_s28 }
  0x3e   : > { %p547_p10 = pnand %p545_p9, %p505_p5 }
  0x3f   : > { %p554_p7 = por %p553_p3, %p552_p1 }
  0x40   : > { %p548_p11 = pneg %p547_p10 }
  0x42   : > { %p555_p4 = pnand %p554_p7, %p548_p11 }
  0x44   : > { %558 = shalt.err (!%p555_p4)
}
  0x45   : > { %421 = dma.hbm_to_vmem [thread:$0]  (!%p762_p2), %s866_s1, 256, %s180_s27, [#allocation6], %s667_s12, %s667_s12, %s668_s17  }
  0x46   : > { %p876_p6 = scmp.ne.s32.totalorder %s875_s22, 0 }
  0x47   : > { %s193_s20 = sand.u32 (!%p876_p6), 1, %s652_s13   ;;  %p877_p5 = scmp.ne.s32.totalorder (!%p876_p6), %s871_s21, 0 }
  0x48   : > { %191 = sbr.rel (%p876_p6) target bundleno = 107 (0x6b), region = 28  ;;  %s399_s23 = sshll.u32 (!%p876_p6), %s193_s20, 4 }
  0x49   : > { %s194_s30 = scalar_lea.sflag (!%p876_p6), [#allocation3], %s193_s20  ;;  %s197_s3 = scalar_lea.vmem (!%p876_p6), [#allocation2], %s399_s23 }
  0x4d   : > { %622 = dma.done.wait (%p877_p5), %s194_s30, 256  }
  0x4e   : > { %624 = vsyncadd (%p877_p5), %s194_s30, 4294967040  ;;  %s203_s29 = scalar_lea.sflag [#allocation6], %s193_s20  ;;  %s206_s4 = scalar_lea.vmem [#allocation5], %s399_s23 }
  0x4f   : > { %626 = dma.done.wait (%p877_p5), %s203_s29, 256  }
  0x50   : > { %628 = vsyncadd (%p877_p5), %s203_s29, 4294967040  ;;  %s402_s12 = sshll.u32 %s656_s14, 4  ;;  %v253_v0 = vlaneseq  ;;  %s229_s17 = sand.u32 1, %s640_s10   ;;  %v245_v6 = vld [vmem:[%s197_s3] sm:$0xff]  ;;  %v246_v7 = vld [vmem:[%s197_s3 + $0x8] sm:$0xff] }
  0x51   : > { %v256_v1 = vstv %s402_s12  ;;  %s401_s22 = sshll.u32 %s229_s17, 3  ;;  %v247_v8 = vld [vmem:[%s206_s4] sm:$0xff]  ;;  %v248_v9 = vld [vmem:[%s206_s4 + $0x8] sm:$0xff]  ;;  %s404_s21 = sshll.u32 %s656_s14, 7 }
  0x52   : > { %v254_v2 = vshrl.u32 %v253_v0, 7  ;;  %v249_v10 = vsub.f32 %v245_v6, %v247_v8  ;;  %v250_v11 = vsub.f32 %v246_v7, %v248_v9  ;;  %s231_s27 = scalar_lea.vmem [#allocation7], %s401_s22  ;;  %s285_s7 = scalar_lea.hbm %s867_s2, %s404_s21 }
  0x53   : > { %s287_s5 = sshll.u32 %s231_s27, 4  ;;  %s274_s8 = scalar_lea.sflag [#allocation4], %s229_s17  ;;  %s288_s5 = int_to_ptr.vmem [resolvable:$true] %s287_s5 }
  0x54   : > { %v255_v3 = vadd.s32 8, %v254_v2  ;;  %v257_v4 = vadd.s32 %v256_v1, %v254_v2  ;;  %s559_s18 = scalar_lea.vmem %s288_s5, 128  ;;  %p878_p4 = scmp.ne.s32.totalorder %s872_s25, 0 }
  0x55   : > { %p560_p2 = scmp.ne.s32.totalorder %s288_s5, %s559_s18  ;;  %s670_s20 = smov [#allocation7]  }
  0x56   : > { %v258_v5 = vadd.s32 %v256_v1, %v255_v3  ;;  %vm259_vm0 = vcmp.lt.s32.totalorder %v257_v4, 16  ;;  %s563_s23 = sshll.u32 %s670_s20, 4  ;;  %s564_s23 = int_to_ptr.vmem [resolvable:$false] %s563_s23 }
  0x57   : > { %v265_v12 = vsel %vm259_vm0, %v249_v10, 0.0  ;;  %p561_p12 = pnand %p560_p2, %p878_p4  ;;  %s565_s30 = scalar_lea.vmem %s564_s23, 256 }
  0x58   : > { %vm260_vm1 = vcmp.lt.s32.totalorder %v258_v5, 16  ;;  %v267_v14 = vmul.f32 %v265_v12, %v265_v12  ;;  %p566_p0 = scmp.lt.s32.totalorder %s288_s5, %s564_s23  ;;  %p567_p8 = scmp.lt.s32.totalorder %s565_s30, %s559_s18 }
  0x59   : > { %v266_v13 = vsel %vm260_vm1, %v250_v11, 0.0  ;;  %p562_p13 = pneg %p561_p12 }
  0x5a   : > { %v268_v15 = vmul.f32 %v266_v13, %v266_v13  ;;  %p568_p9 = por %p567_p8, %p566_p0 }
  0x5c   : > { %v270_v16 = vadd.f32 %v268_v15, %v267_v14  ;;  %p569_p10 = pnand %p568_p9, %p562_p13 }
  0x5e   : > { %272 = vst [vmem:[%s231_s27] sm:$0xff] %v270_v16 }
  0x5f   : > { %572 = shalt.err (!%p569_p10)
}
  0x60   : > { %s573_s14 = scalar_lea.hbm %s285_s7, 128  ;;  %s577_s4 = scalar_lea.hbm %s867_s2, 256 }
  0x61   : > { %p574_p11 = scmp.ne.s32.totalorder %s285_s7, %s573_s14  ;;  %p578_p7 = scmp.lt.s32.totalorder %s285_s7, %s867_s2 }
  0x62   : > { %p579_p6 = scmp.lt.s32.totalorder %s577_s4, %s573_s14 }
  0x63   : > { %p575_p1 = pnand %p574_p11, %p878_p4 }
  0x64   : > { %p580_p5 = por %p579_p6, %p578_p7 }
  0x65   : > { %p576_p3 = pneg %p575_p1 }
  0x67   : > { %p581_p2 = pnand %p580_p5, %p576_p3 }
  0x69   : > { %584 = shalt.err (!%p581_p2)
}
  0x6a   : > { %413 = dma.vmem_to_hbm [thread:$0]  (%p878_p4), %s288_s5, 128, %s285_s7, %s274_s8  }
  0x6b PF: > { %s299_s22 = sand.u32 1, %s636_s9   ;;  %p879_p12 = scmp.ne.s32.totalorder %s873_s26, 0 }
  0x6c   : > { %p880_p13 = scmp.ge.s32.totalorder %s664_s16, 2  ;;  %s300_s21 = scalar_lea.sflag [#allocation4], %s299_s22 }
  0x6e   : > { %p423_p0 = pnand %p880_p13, %p879_p12 }
  0x70   : > { %p424_p8 = pneg %p423_p0 }
  0x72   : > { %630 = dma.done.wait (%p424_p8), %s300_s21, 128  }
  0x73   : > { %632 = vsyncadd (%p424_p8), %s300_s21, 4294967168  ;;  %s21_s16 = sadd.s32 1, %s664_s16   ;;  %s881_s9 = smov %s640_s10 }
  0x74   : > { %p18_p9 = scmp.ge.s32.totalorder %s21_s16, 4   ;;  %s882_s10 = smov %s644_s11 }
  0x75   : > { %s883_s11 = smov %s744_s24  ;;  %s884_s12 = smov %s652_s13 }
  0x76   : > { %s855_s13 = smov 0   ;;  %s885_s14 = smov %s660_s15 }
  0x77   : > { %s886_s15 = smov %s888_s19  ;;  %20 = sbr.rel (!%p18_p9) target bundleno = 9 (0x9), region = 90 }
  0x7c   :  { %305 = vsyncpa [#allocation3], 1 }
  0x7d   :  { %307 = vsyncpa [#allocation3 + $0x1], 1 }
  0x7e   :  { %308 = vsyncpa [#allocation6], 1 }
  0x7f   :  { %310 = vsyncpa [#allocation6 + $0x1], 1 }
  0x80   :  { %311 = vsyncpa [#allocation4], 1 }
  0x81   :  { %313 = vsyncpa [#allocation4 + $0x1], 1 }

</bundles_post_ra>
